<compile_context>
chip_gen: v5e
topology: v5e:2x2
jax: 0.10.0
libtpu: 0.0.40
codegen_flags: <defaults>
</compile_context>

<pallas_src>
import functools

import jax
import jax.numpy as jnp
from jax.experimental import pallas as pl
from jax.experimental.pallas import tpu as pltpu


def _round_up(n, m):
    return ((n + m - 1) // m) * m


def _mlp_kernel(num_linear, action_size, x_ref, w_ref, b_ref, out_ref):
    """One batch tile of the MLP.

    x_ref  : [TB, F]           bf16 padded activations (lane-dense)
    w_ref  : [L, F, F]         bf16 stacked, zero-padded weights (VMEM resident)
    b_ref  : [L, 1, F]         f32  stacked, zero-padded biases
    out_ref: [TB, action_size] f32  (narrow, unpadded output)
    """
    h = x_ref[...]                                        # bf16 [TB, F]
    for l in range(num_linear):
        w = w_ref[l]                                      # bf16 [F, F]
        b = b_ref[l]                                      # f32  [1, F]
        # bf16 x bf16 on the MXU, f32 accumulation; bias add in f32 on the VPU.
        h = jnp.dot(h, w, preferred_element_type=jnp.float32) + b
        if l < num_linear - 1:
            h = jnp.maximum(h, 0.0)                       # ReLU (VPU, f32)
            h = h.astype(jnp.bfloat16)                    # back to MXU-native
    out_ref[...] = h[:, :action_size]                     # narrow f32 store


def prepare_params(weights, biases):
    """One-time packing of per-layer params into stacked, padded operands.

    weights[i] : [in_i, out_i] f32 (already transposed vs torch's [out, in])
    biases[i]  : [out_i]       f32
    Returns (w_all bf16 [L, F, F], b_all f32 [L, 1, F], f_pad, action_size).
    Call once per parameter set and reuse across forward calls.
    """
    num_linear = len(weights)
    assert len(biases) == num_linear
    dims = [weights[0].shape[0]] + [w.shape[1] for w in weights]
    f_pad = _round_up(max(dims), 128)
    action_size = weights[-1].shape[1]

    w_all = jnp.zeros((num_linear, f_pad, f_pad), jnp.float32)
    b_all = jnp.zeros((num_linear, 1, f_pad), jnp.float32)
    for i, (w, b) in enumerate(zip(weights, biases)):
        w_all = w_all.at[i, : w.shape[0], : w.shape[1]].set(w)
        b_all = b_all.at[i, :, : b.shape[0]].set(b.reshape(1, -1))
    w_all = w_all.astype(jnp.bfloat16)        # MXU-native, halves HBM/VMEM bytes
    return w_all, b_all, f_pad, action_size


def qnetwork_forward(x, w_all, b_all, f_pad, action_size, *, block_b=1024):
    """Forward pass of QNetwork with pre-packed params.

    x : [B, state_size] f32
    returns [B, action_size] f32
    """
    num_linear = w_all.shape[0]
    B, state_size = x.shape

    # Batch tiling: multiple of 8 sublanes; large tiles for realistic RL
    # batches.  Cap at 4096 so four double-buffered (tb,128) activation
    # buffers stay well inside v7x's per-TC scoped VMEM; comfortable on
    # v5e/v6e's 128 MiB.
    block_b = min(block_b, 4096)
    tb = block_b if B >= block_b else _round_up(max(B, 1), 8)
    b_pad = _round_up(B, tb)

    # Pad activations in bf16 (half the pre-pass + kernel-read bytes of f32).
    x_pad = jnp.zeros((b_pad, f_pad), jnp.bfloat16)
    x_pad = x_pad.at[:B, :state_size].set(x.astype(jnp.bfloat16))

    kernel = functools.partial(_mlp_kernel, num_linear, action_size)
    out = pl.pallas_call(
        kernel,
        out_shape=jax.ShapeDtypeStruct((b_pad, action_size), jnp.float32),
        grid=(b_pad // tb,),
        in_specs=[
            pl.BlockSpec((tb, f_pad), lambda i: (i, 0)),                    # x tile
            pl.BlockSpec((num_linear, f_pad, f_pad), lambda i: (0, 0, 0)),  # W (resident)
            pl.BlockSpec((num_linear, 1, f_pad), lambda i: (0, 0, 0)),      # b (resident)
        ],
        # Block last dim == full array dim (action_size), so the narrow
        # unpadded output block is legal; stores are masked but tiny.
        out_specs=pl.BlockSpec((tb, action_size), lambda i: (i, 0)),
        compiler_params=pltpu.CompilerParams(
            dimension_semantics=("parallel",)),          # shard batch across TCs (v7x)
    )(x_pad, w_all, b_all)

    return out[:B]       # padded batch rows hold garbage; never read past :B


def make_params(key, state_size, action_size, num_layers, num_neurons):
    """Deterministic synthetic parameters (PyTorch-Linear-like uniform init)."""
    dims = [state_size] + [num_neurons] * num_layers + [action_size]
    weights, biases = [], []
    for i in range(len(dims) - 1):
        fan_in, fan_out = dims[i], dims[i + 1]
        key, kw, kb = jax.random.split(key, 3)
        bound = 1.0 / jnp.sqrt(jnp.float32(fan_in))
        # stored as [in, out] (transposed relative to torch's [out, in])
        w = jax.random.uniform(kw, (fan_in, fan_out), jnp.float32, -bound, bound)
        b = jax.random.uniform(kb, (fan_out,), jnp.float32, -bound, bound)
        weights.append(w)
        biases.append(b)
    return weights, biases


def reference_forward(x, weights, biases):
    """Pure-JAX reference mirroring the kernel's precision (bf16 matmul, f32 acc)."""
    h = x.astype(jnp.bfloat16)
    n = len(weights)
    for i, (w, b) in enumerate(zip(weights, biases)):
        h = jax.lax.dot_general(
            h, w.astype(jnp.bfloat16),
            (((1,), (0,)), ((), ())),
            preferred_element_type=jnp.float32) + b.reshape(1, -1)
        if i < n - 1:
            h = jnp.maximum(h, 0.0).astype(jnp.bfloat16)
    return h


if __name__ == "__main__":
    # Shapes implied by the module: flatten_state -> state_size features,
    # action_size = num_candidates. Small synthetic sizes:
    #   user_interest(10) + age(1) + sex(1) + personality(5)
    #   + qualities(8) + lengths(8) + popularity(8) + ratings(8) = 49
    batch = 2
    state_size = 49
    action_size = 8
    num_layers = 2
    num_neurons = 32

    key = jax.random.PRNGKey(0)
    key, kx = jax.random.split(key)
    x = jax.random.normal(kx, (batch, state_size), jnp.float32)

    weights, biases = make_params(key, state_size, action_size,
                                  num_layers, num_neurons)

    # One-time parameter packing (reuse across every env step / forward call).
    w_all, b_all, f_pad, act = prepare_params(weights, biases)

    out = qnetwork_forward(x, w_all, b_all, f_pad, act)
    out = jax.block_until_ready(out)

    ref = reference_forward(x, weights, biases)
    assert out.shape == (batch, action_size)
    assert jnp.allclose(out, ref, atol=1e-3, rtol=1e-3), float(
        jnp.max(jnp.abs(out - ref)))

    print("KERNEL_OK")
</pallas_src>

<mosaic_0001>
module attributes {stable_mosaic.version = 11 : i64} {
  func.func @_mlp_kernel(%arg0: i32, %arg1: memref<8x128xbf16, #tpu.memory_space<vmem>>, %arg2: memref<3x128x128xbf16, #tpu.memory_space<vmem>>, %arg3: memref<3x1x128xf32, #tpu.memory_space<vmem>>, %arg4: memref<8x8xf32, #tpu.memory_space<vmem>>) attributes {dimension_semantics = [#tpu.dimension_semantics<parallel>], iteration_bounds = array<i64: 1>, scalar_prefetch = 0 : i64, scratch_operands = 0 : i64, tpu.core_type = #tpu.core_type<tc>, window_params = [{transform_indices = @transform_0, window_bounds = array<i64: 8, 128>}, {pipeline_mode = #tpu.pipeline_mode<synchronous>, transform_indices = @transform_1, window_bounds = array<i64: 3, 128, 128>}, {pipeline_mode = #tpu.pipeline_mode<synchronous>, transform_indices = @transform_2, window_bounds = array<i64: 3, 1, 128>}, {transform_indices = @transform_3, window_bounds = array<i64: 8, 8>}]} {
    %c0 = arith.constant 0 : index
    %c0_0 = arith.constant 0 : index
    %0 = vector.load %arg1[%c0, %c0_0] : memref<8x128xbf16, #tpu.memory_space<vmem>>, vector<8x128xbf16>
    %c0_1 = arith.constant 0 : index
    %c0_2 = arith.constant 0 : index
    %c0_3 = arith.constant 0 : index
    %1 = vector.load %arg2[%c0_1, %c0_2, %c0_3] : memref<3x128x128xbf16, #tpu.memory_space<vmem>>, vector<1x128x128xbf16>
    %2 = vector.shape_cast %1 : vector<1x128x128xbf16> to vector<128x128xbf16>
    %c0_4 = arith.constant 0 : index
    %c0_5 = arith.constant 0 : index
    %c0_6 = arith.constant 0 : index
    %3 = vector.load %arg3[%c0_4, %c0_5, %c0_6] : memref<3x1x128xf32, #tpu.memory_space<vmem>>, vector<1x1x128xf32>
    %4 = vector.shape_cast %3 : vector<1x1x128xf32> to vector<1x128xf32>
    %cst = arith.constant dense<0.000000e+00> : vector<8x128xf32>
    %5 = tpu.matmul %0, %2, %cst {dimension_numbers = #tpu.dot_dimension_numbers<[1], [0], [0], [1], [0, 0, 1, 1], [], []>} : vector<8x128xbf16>, vector<128x128xbf16>, vector<8x128xf32> -> vector<8x128xf32>
    %6 = vector.broadcast %4 : vector<1x128xf32> to vector<8x128xf32>
    %7 = arith.addf %5, %6 : vector<8x128xf32>
    %cst_7 = arith.constant 0.000000e+00 : f32
    %8 = vector.broadcast %cst_7 : f32 to vector<8x128xf32>
    %9 = arith.maximumf %7, %8 : vector<8x128xf32>
    %10 = arith.truncf %9 : vector<8x128xf32> to vector<8x128xbf16>
    %c1 = arith.constant 1 : index
    %c0_8 = arith.constant 0 : index
    %c0_9 = arith.constant 0 : index
    %11 = vector.load %arg2[%c1, %c0_8, %c0_9] : memref<3x128x128xbf16, #tpu.memory_space<vmem>>, vector<1x128x128xbf16>
    %12 = vector.shape_cast %11 : vector<1x128x128xbf16> to vector<128x128xbf16>
    %c1_10 = arith.constant 1 : index
    %c0_11 = arith.constant 0 : index
    %c0_12 = arith.constant 0 : index
    %13 = vector.load %arg3[%c1_10, %c0_11, %c0_12] : memref<3x1x128xf32, #tpu.memory_space<vmem>>, vector<1x1x128xf32>
    %14 = vector.shape_cast %13 : vector<1x1x128xf32> to vector<1x128xf32>
    %cst_13 = arith.constant dense<0.000000e+00> : vector<8x128xf32>
    %15 = tpu.matmul %10, %12, %cst_13 {dimension_numbers = #tpu.dot_dimension_numbers<[1], [0], [0], [1], [0, 0, 1, 1], [], []>} : vector<8x128xbf16>, vector<128x128xbf16>, vector<8x128xf32> -> vector<8x128xf32>
    %16 = vector.broadcast %14 : vector<1x128xf32> to vector<8x128xf32>
    %17 = arith.addf %15, %16 : vector<8x128xf32>
    %cst_14 = arith.constant 0.000000e+00 : f32
    %18 = vector.broadcast %cst_14 : f32 to vector<8x128xf32>
    %19 = arith.maximumf %17, %18 : vector<8x128xf32>
    %20 = arith.truncf %19 : vector<8x128xf32> to vector<8x128xbf16>
    %c2 = arith.constant 2 : index
    %c0_15 = arith.constant 0 : index
    %c0_16 = arith.constant 0 : index
    %21 = vector.load %arg2[%c2, %c0_15, %c0_16] : memref<3x128x128xbf16, #tpu.memory_space<vmem>>, vector<1x128x128xbf16>
    %22 = vector.shape_cast %21 : vector<1x128x128xbf16> to vector<128x128xbf16>
    %c2_17 = arith.constant 2 : index
    %c0_18 = arith.constant 0 : index
    %c0_19 = arith.constant 0 : index
    %23 = vector.load %arg3[%c2_17, %c0_18, %c0_19] : memref<3x1x128xf32, #tpu.memory_space<vmem>>, vector<1x1x128xf32>
    %24 = vector.shape_cast %23 : vector<1x1x128xf32> to vector<1x128xf32>
    %cst_20 = arith.constant dense<0.000000e+00> : vector<8x128xf32>
    %25 = tpu.matmul %20, %22, %cst_20 {dimension_numbers = #tpu.dot_dimension_numbers<[1], [0], [0], [1], [0, 0, 1, 1], [], []>} : vector<8x128xbf16>, vector<128x128xbf16>, vector<8x128xf32> -> vector<8x128xf32>
    %26 = vector.broadcast %24 : vector<1x128xf32> to vector<8x128xf32>
    %27 = arith.addf %25, %26 : vector<8x128xf32>
    %28 = vector.extract_strided_slice %27 {offsets = [0, 0], sizes = [8, 8], strides = [1, 1]} : vector<8x128xf32> to vector<8x8xf32>
    %c0_21 = arith.constant 0 : index
    %c0_22 = arith.constant 0 : index
    %29 = vector.load %arg4[%c0_21, %c0_22] : memref<8x8xf32, #tpu.memory_space<vmem>>, vector<8x8xf32>
    tpu.vector_store %arg4[%c0_21, %c0_22], %28 {strides = array<i32>} : memref<8x8xf32, #tpu.memory_space<vmem>>, vector<8x8xf32>,
    return
  }
  func.func @transform_0(%arg0: i32) -> (i32, i32) {
    %c0_i32 = arith.constant 0 : i32
    %c0_i32_0 = arith.constant 0 : i32
    return %arg0, %c0_i32 : i32, i32
  }
  func.func @transform_1(%arg0: i32) -> (i32, i32, i32) {
    %c0_i32 = arith.constant 0 : i32
    %c0_i32_0 = arith.constant 0 : i32
    %c0_i32_1 = arith.constant 0 : i32
    %c0_i32_2 = arith.constant 0 : i32
    return %c0_i32, %c0_i32_0, %c0_i32_1 : i32, i32, i32
  }
  func.func @transform_2(%arg0: i32) -> (i32, i32, i32) {
    %c0_i32 = arith.constant 0 : i32
    %c0_i32_0 = arith.constant 0 : i32
    %c0_i32_1 = arith.constant 0 : i32
    %c0_i32_2 = arith.constant 0 : i32
    return %c0_i32, %c0_i32_0, %c0_i32_1 : i32, i32, i32
  }
  func.func @transform_3(%arg0: i32) -> (i32, i32) {
    %c0_i32 = arith.constant 0 : i32
    %c0_i32_0 = arith.constant 0 : i32
    return %arg0, %c0_i32 : i32, i32
  }
}

</mosaic_0001>

<bundles_post_ra>
// kernel: tpu_custom_call.1
= control target key start
LH: loop header
LB: loop body
LE: loop exit
PB: predicated region body
PF: predicated region fallthrough
CT: control target
= control target key end

     0   :  { %8 = vsyncpa [#allocation3], 0  ;;  %s605_s0 = inlined_call_operand.hbm [shape: bf16[8,128], index: 0, kind: input, shape index: {}]   ;;  %s606_s1 = inlined_call_operand.hbm [shape: bf16[3,128,128], index: 1, kind: input, shape index: {}]   ;;  %s607_s2 = inlined_call_operand.hbm [shape: f32[3,1,128], index: 2, kind: input, shape index: {}]   ;;  %s608_s3 = inlined_call_operand.hbm [shape: f32[8,8], index: 3, kind: output, shape index: {}]  }
   0x1   :  { %9 = vsyncpa [#allocation6], 0  ;;  %s26_s14 = sshll.u32 %s606_s1, 4  ;;  %s27_s14 = int_to_ptr.hbm [resolvable:$true] %s26_s14 }
   0x2   :  { %10 = vsyncpa [#allocation4], 0  ;;  %s565_s15 = smov [#allocation5]   ;;  %s16_s19 = sshll.u32 %s605_s0, 4  ;;  %s17_s19 = int_to_ptr.hbm [resolvable:$true] %s16_s19 }
   0x3   :  { %s28_s16 = sshll.u32 %s565_s15, 4  ;;  %s566_s20 = smov 64   ;;  %s29_s16 = int_to_ptr.vmem [resolvable:$true] %s28_s16 }
   0x4   :  { %s567_s21 = smov 4   ;;  %s568_s22 = smov [#allocation2]  }
   0x5   :  { %34 = dma.hbm_to_vmem [thread:$0]  %s27_s14, 3072, %s29_s16, [#allocation6], %s566_s20, %s566_s20, %s567_s21  }
   0x6   :  { %s18_s23 = sshll.u32 %s568_s22, 4  ;;  %s39_s26 = sshll.u32 %s607_s2, 4  ;;  %s19_s23 = int_to_ptr.vmem [resolvable:$true] %s18_s23  ;;  %s40_s26 = int_to_ptr.hbm [resolvable:$true] %s39_s26 }
   0x7   :  { %21 = dma.hbm_to_vmem [thread:$0]  %s17_s19, 64, %s19_s23, [#allocation3]  }
   0x8   :  { %s569_s1 = smov [#allocation7]   ;;  %s570_s28 = smov 16  }
   0x9   :  { %s41_s27 = sshll.u32 %s569_s1, 4  ;;  %s571_s29 = smov 1   ;;  %s42_s27 = int_to_ptr.vmem [resolvable:$true] %s41_s27 }
   0xa   :  { %47 = dma.hbm_to_vmem [thread:$0]  %s40_s26, 48, %s42_s27, [#allocation6], %s570_s28, %s570_s28, %s571_s29  }
   0xb   :  { %559 = dma.done.wait [#allocation3], 64  }
   0xc   :  { %560 = vsyncadd [#allocation3], 4294967232 }
   0xd   :  { %561 = dma.done.wait [#allocation6], 3120  }
   0xe   :  { %562 = vsyncadd [#allocation6], 4294964176  ;;  %v435_v0 = vld [vmem:[#allocation5 + $0x38] sm:$0xff]  ;;  %v434_v1 = vld [vmem:[#allocation5 + $0x30] sm:$0xff]  ;;  %s572_s0 = smov [#allocation8]   ;;  %s321_s5 = sshll.u32 %s608_s3, 4  ;;  %s322_s5 = int_to_ptr.hbm [resolvable:$true] %s321_s5 }
   0xf   :  { %129 = vmatpush.bf16.msra.mxu0 %v435_v0  ;;  %v443_v2 = vld [vmem:[#allocation5 + $0x78] sm:$0xff]  ;;  %v442_v3 = vld [vmem:[#allocation5 + $0x70] sm:$0xff]  ;;  %v433_v4 = vld [vmem:[#allocation5 + $0x28] sm:$0xff]  ;;  %s319_s2 = sshll.u32 %s572_s0, 4  ;;  %vm312_vm0 = vcmask 64512   ;;  %s320_s2 = int_to_ptr.vmem [resolvable:$true] %s319_s2 }
  0x10   :  { %214 = vmatpush.bf16.msra.mxu1 %v443_v2  ;;  %v441_v5 = vld [vmem:[#allocation5 + $0x68] sm:$0xff]  ;;  %v432_v6 = vld [vmem:[#allocation5 + $0x20] sm:$0xff]  ;;  %v431_v8 = vld [vmem:[#allocation5 + $0x18] sm:$0xff] }
  0x11   :  { %v440_v7 = vld [vmem:[#allocation5 + $0x60] sm:$0xff]  ;;  %v439_v9 = vld [vmem:[#allocation5 + $0x58] sm:$0xff]  ;;  %v430_v10 = vld [vmem:[#allocation5 + $0x10] sm:$0xff] }
  0x12   :  { %v438_v11 = vld [vmem:[#allocation5 + $0x50] sm:$0xff]  ;;  %v429_v12 = vld [vmem:[#allocation5 + $0x8] sm:$0xff]  ;;  %v428_v13 = vld [vmem:[#allocation5] sm:$0xff] }
  0x13   :  { %130 = vmatpush.bf16.msra.mxu0 %v434_v1  ;;  %v60_v14 = vld [vmem:[#allocation2] sm:$0xf]  ;;  %v437_v15 = vld [vmem:[#allocation5 + $0x48] sm:$0xff]  ;;  %v436_v16 = vld [vmem:[#allocation5 + $0x40] sm:$0xff] }
  0x14   :  { %215 = vmatpush.bf16.msra.mxu1 %v442_v3  ;;  %v451_v17 = vld [vmem:[#allocation5 + $0xb8] sm:$0xff]  ;;  %v450_v18 = vld [vmem:[#allocation5 + $0xb0] sm:$0xff]  ;;  %v449_v19 = vld [vmem:[#allocation5 + $0xa8] sm:$0xff] }
  0x15   :  { %299 = vmatpush.bf16.msra.mxu2 %v451_v17  ;;  %v448_v20 = vld [vmem:[#allocation5 + $0xa0] sm:$0xff]  ;;  %v447_v21 = vld [vmem:[#allocation5 + $0x98] sm:$0xff]  ;;  %v446_v22 = vld [vmem:[#allocation5 + $0x90] sm:$0xff] }
  0x16   :  { %v460_v23 = vld [vmem:[#allocation7] ss:$0 sm:$0xff]  ;;  %v445_v29 = vld [vmem:[#allocation5 + $0x88] sm:$0xff]  ;;  %v461_v31 = vld [vmem:[#allocation7 + $0x1] ss:$0 sm:$0xff] }
  0x17   :  { %131 = vmatpush.bf16.msra.mxu0 %v433_v4  ;;  %v444_v30 = vld [vmem:[#allocation5 + $0x80] sm:$0xff] }
  0x18   :  { %216 = vmatpush.bf16.msra.mxu1 %v441_v5  ;;  %v462_v37 = vld [vmem:[#allocation7 + $0x2] ss:$0 sm:$0xff] }
  0x19   :  { %300 = vmatpush.bf16.msra.mxu2 %v450_v18 }
  0x1b   :  { %132 = vmatpush.bf16.msra.mxu0 %v432_v6 }
  0x1c   :  { %217 = vmatpush.bf16.msra.mxu1 %v440_v7 }
  0x1d   :  { %301 = vmatpush.bf16.msra.mxu2 %v449_v19 }
  0x1f   :  { %133 = vmatpush.bf16.msra.mxu0 %v431_v8 }
  0x20   :  { %218 = vmatpush.bf16.msra.mxu1 %v439_v9 }
  0x21   :  { %302 = vmatpush.bf16.msra.mxu2 %v448_v20 }
  0x23   :  { %134 = vmatpush.bf16.msra.mxu0 %v430_v10 }
  0x24   :  { %219 = vmatpush.bf16.msra.mxu1 %v438_v11 }
  0x25   :  { %303 = vmatpush.bf16.msra.mxu2 %v447_v21 }
  0x27   :  { %135 = vmatpush.bf16.msra.mxu0 %v429_v12 }
  0x28   :  { %220 = vmatpush.bf16.msra.mxu1 %v437_v15 }
  0x29   :  { %304 = vmatpush.bf16.msra.mxu2 %v446_v22 }
  0x2b   :  { %136 = vmatpush.bf16.msra.mxu0 %v428_v13 }
  0x2c   :  { %221 = vmatpush.bf16.msra.mxu1 %v436_v16 }
  0x2d   :  { %305 = vmatpush.bf16.msra.mxu2 %v445_v29 }
  0x2e   :  { %137 = vmatmul.bf16.vlgmr.msra.gmra.mxu0 %v60_v14 }
  0x31   :  { %306 = vmatpush.bf16.msra.mxu2 %v444_v30 }
  0xab   :  { %v138_v24 = vpop.f32.mrf.mxu0 }
  0xac   :  { %v139_v25 = vadd.f32 %v460_v23, %v138_v24 }
  0xae   :  { %v142_v26 = vmax.f32 %v139_v25, 0.0 }
  0xb0   :  { %v143_v27 = vpack.c.bf16 %v142_v26, %v142_v26 }
  0xb2   :  { %222 = vmatmul.bf16.vlgmr.msra.gmra.mxu1 %v143_v27 }
  0xb3   :  { %v140_v28 = vpop.f32.mrf.mxu0 }
 0x12f   :  { %v223_v32 = vpop.f32.mrf.mxu1 }
 0x130   :  { %v224_v33 = vadd.f32 %v461_v31, %v223_v32 }
 0x132   :  { %v227_v34 = vmax.f32 %v224_v33, 0.0 }
 0x134   :  { %v228_v35 = vpack.c.bf16 %v227_v34, %v227_v34 }
 0x136   :  { %307 = vmatmul.bf16.vlgmr.msra.gmra.mxu2 %v228_v35 }
 0x137   :  { %v225_v36 = vpop.f32.mrf.mxu1 }
 0x1b9   :  { %v308_v38 = vpop.f32.mrf.mxu2 }
 0x1ba   :  { %v309_v39 = vadd.f32 %v462_v37, %v308_v38 }
 0x1bc   :  { %313 = vst.msk [vmem:[#allocation8] sm:$0xff] %vm312_vm0, %v309_v39 }
 0x1bd   :  { %324 = dma.vmem_to_hbm [thread:$0]  %s320_s2, 128, %s322_s5, [#allocation4]  }
 0x1c1   :  { %v310_v40 = vpop.f32.mrf.mxu2 }
 0x1c2   :  { %563 = dma.done.wait [#allocation4], 128  }
 0x1c3   :  { %564 = vsyncadd [#allocation4], 4294967168 }
 0x1c4   :  { %329 = vsyncpa [#allocation3], 1 }
 0x1c5   :  { %330 = vsyncpa [#allocation6], 1 }
 0x1c6   :  { %331 = vsyncpa [#allocation4], 1 }

</bundles_post_ra>
